<compile_context>
chip_gen: v6e
topology: v6e:2x2x1
jax: 0.10.0
libtpu: 0.0.40
codegen_flags: <defaults>
</compile_context>

<pallas_src>
import functools

import jax
import jax.numpy as jnp
import numpy as np
from jax.experimental import pallas as pl
from jax.experimental.pallas import tpu as pltpu


def _round_up(x, m):
    return ((x + m - 1) // m) * m


# ----------------------------------------------------------------------------
# Fused classifier kernel (one B-tile per grid step; weights VMEM-resident)
# ----------------------------------------------------------------------------
def _clf_kernel(x_ref, w1_ref, t1_ref, w2_ref, t2_ref, w3_ref, b3_ref, out_ref):
    # In-kernel bf16 cast of the f32 embedding (no wrapper-side cast launch).
    x = x_ref[...].astype(jnp.bfloat16)                              # (TB, D)

    # Layer 1: Linear(D->512, no bias) with BN1 scale folded into W1, + shift, ReLU.
    # Epilogue stays f32; cast to bf16 only as the next matmul's input.
    h1 = jnp.dot(x, w1_ref[...], preferred_element_type=jnp.float32)
    h1 = jnp.maximum(h1 + t1_ref[...], 0.0).astype(jnp.bfloat16)

    # Layer 2: Linear(512->256, no bias) with BN2 scale folded into W2, + shift, ReLU.
    h2 = jnp.dot(h1, w2_ref[...], preferred_element_type=jnp.float32)
    h2 = jnp.maximum(h2 + t2_ref[...], 0.0).astype(jnp.bfloat16)

    # Layer 3: Linear(256->num_classes_padded) + bias -> f32 logits.
    out_ref[...] = (jnp.dot(h2, w3_ref[...], preferred_element_type=jnp.float32)
                    + b3_ref[...])


@functools.partial(jax.jit, static_argnames=("num_classes",))
def uvnet_classifier_forward(graph_emb, kparams, num_classes):
    """Fused _NonLinearClassifier forward (eval mode).

    graph_emb: (B, D) float32 graph embedding.
    kparams:   dict from `prepare_kernel_params` (bf16 folded weights, f32 shifts).
    Returns (B, num_classes) float32 logits.
    """
    B, D = graph_emb.shape
    w1, t1 = kparams["w1"], kparams["t1"]
    w2, t2 = kparams["w2"], kparams["t2"]
    w3, b3 = kparams["w3"], kparams["b3"]
    H1, H2, Cp = w1.shape[1], w2.shape[1], w3.shape[1]

    if B <= 512:
        # Single grid step over the whole (unpadded) batch.  Block shapes equal
        # to the full array dims are exempt from the (8,128) divisibility rule,
        # so no batch padding / wasted MXU rows and no pipeline overhead.
        TB, BP = B, B
    else:
        # Large batch: 256-row tiles fill the 256-wide MXU (v6e/v7x), amortize
        # per-step grid overhead, and give even step counts for v7x's two TCs
        # on power-of-two batches.  Working set stays well under VMEM limits.
        TB = 256
        BP = _round_up(B, TB)

    x = graph_emb
    if BP != B:
        # Only the large, non-tile-multiple batch path pads (inside this jit).
        x = jnp.pad(x, ((0, BP - B), (0, 0)))

    # Weights / shifts: same block every grid step -> DMA'd once, VMEM-resident.
    resident = lambda shape: pl.BlockSpec(shape, lambda i: (0,) * len(shape))

    out = pl.pallas_call(
        _clf_kernel,
        out_shape=jax.ShapeDtypeStruct((BP, Cp), jnp.float32),
        grid_spec=pltpu.PrefetchScalarGridSpec(
            num_scalar_prefetch=0,
            grid=(BP // TB,),
            in_specs=[
                pl.BlockSpec((TB, D), lambda i: (i, 0)),   # x tile (f32, pipelined)
                resident((D, H1)),                         # W1 (BN1 scale folded, bf16)
                resident((1, H1)),                         # BN1 shift (f32)
                resident((H1, H2)),                        # W2 (BN2 scale folded, bf16)
                resident((1, H2)),                         # BN2 shift (f32)
                resident((H2, Cp)),                        # W3 (padded to 128 lanes, bf16)
                resident((1, Cp)),                         # b3 (padded, f32)
            ],
            out_specs=pl.BlockSpec((TB, Cp), lambda i: (i, 0)),
        ),
        compiler_params=pltpu.CompilerParams(
            dimension_semantics=("parallel",)),            # v7x: split batch over TCs
    )(x, w1, t1, w2, t2, w3, b3)

    # Slice lives in the same jitted XLA program as the pallas_call.
    return out[:B, :num_classes]


# ----------------------------------------------------------------------------
# Deterministic parameter construction (mirrors _NonLinearClassifier.weights_init)
# ----------------------------------------------------------------------------
def _kaiming_uniform(key, fan_in, fan_out):
    # torch.nn.init.kaiming_uniform_ (a=0): bound = sqrt(2) * sqrt(3 / fan_in)
    bound = np.sqrt(2.0) * np.sqrt(3.0 / fan_in)
    # stored as (in, out) = transpose of torch's (out, in) weight
    return jax.random.uniform(key, (fan_in, fan_out), jnp.float32,
                              minval=-bound, maxval=bound)


def make_raw_params(key, input_dim=256, num_classes=10, eps=1e-5):
    """Float32 'torch-equivalent' params with BN folded to scale/shift.

    BN gamma/beta/running stats are randomized to simulate a trained model
    (fresh-init BN would make the BN math trivially an identity scale)."""
    ks = jax.random.split(key, 11)
    w1 = _kaiming_uniform(ks[0], input_dim, 512)
    w2 = _kaiming_uniform(ks[1], 512, 256)
    w3 = _kaiming_uniform(ks[2], 256, num_classes)
    b3 = jnp.zeros((1, num_classes), jnp.float32)   # bias filled with 0.0

    def bn_fold(kg, kb, km, kv, n):
        gamma = 1.0 + 0.1 * jax.random.normal(kg, (1, n), jnp.float32)
        beta = 0.1 * jax.random.normal(kb, (1, n), jnp.float32)
        mean = 0.1 * jax.random.normal(km, (1, n), jnp.float32)
        var = jax.nn.softplus(jax.random.normal(kv, (1, n), jnp.float32)) + 0.5
        scale = gamma / jnp.sqrt(var + eps)
        shift = beta - mean * scale
        return scale, shift

    s1, t1 = bn_fold(ks[3], ks[4], ks[5], ks[6], 512)
    s2, t2 = bn_fold(ks[7], ks[8], ks[9], ks[10], 256)

    return {"w1": w1, "s1": s1, "t1": t1,
            "w2": w2, "s2": s2, "t2": t2,
            "w3": w3, "b3": b3}


def prepare_kernel_params(raw, lane_pad=128):
    """Fold BN scales into weights, cast to bf16, pad classes to lane width."""
    C = raw["w3"].shape[1]
    Cp = _round_up(C, lane_pad)
    w1 = (raw["w1"] * raw["s1"]).astype(jnp.bfloat16)        # scale folded per out-feature
    w2 = (raw["w2"] * raw["s2"]).astype(jnp.bfloat16)
    w3 = jnp.pad(raw["w3"], ((0, 0), (0, Cp - C))).astype(jnp.bfloat16)
    b3 = jnp.pad(raw["b3"], ((0, 0), (0, Cp - C))).astype(jnp.float32)
    return {"w1": w1, "t1": raw["t1"].astype(jnp.float32),
            "w2": w2, "t2": raw["t2"].astype(jnp.float32),
            "w3": w3, "b3": b3}


# ----------------------------------------------------------------------------
# Pure-JAX f32 reference (same math as the PyTorch module in eval mode)
# ----------------------------------------------------------------------------
def reference_forward(x, p):
    h1 = jnp.maximum(x @ p["w1"] * p["s1"] + p["t1"], 0.0)
    h2 = jnp.maximum(h1 @ p["w2"] * p["s2"] + p["t2"], 0.0)
    return h2 @ p["w3"] + p["b3"]


if __name__ == "__main__":
    key = jax.random.PRNGKey(0)
    k_emb1, k_emb2, k_emb3, k_par = jax.random.split(key, 4)

    graph_emb_dim = 256        # default graph_emb_dim of UVNetClassifier
    num_classes = 10

    raw = make_raw_params(k_par, input_dim=graph_emb_dim, num_classes=num_classes)
    kparams = prepare_kernel_params(raw)

    # Case 1: small batch         -> single-step, no padding at all.
    # Case 2: B=200 (non-aligned) -> still single-step, no padding (full-dim block).
    # Case 3: B=600               -> tiled path: TB=256, padded to 768, 3 grid steps.
    for k_emb, B in ((k_emb1, 8), (k_emb2, 200), (k_emb3, 600)):
        emb = jax.random.normal(k_emb, (B, graph_emb_dim), jnp.float32)
        logits = jax.block_until_ready(
            uvnet_classifier_forward(emb, kparams, num_classes))
        ref = reference_forward(emb, raw)
        assert logits.shape == (B, num_classes)
        np.testing.assert_allclose(np.asarray(logits), np.asarray(ref),
                                   rtol=5e-2, atol=5e-2)   # bf16 matmul tolerance

    print("KERNEL_OK")
</pallas_src>

<mosaic_0001>
module attributes {stable_mosaic.version = 11 : i64} {
  func.func @_clf_kernel(%arg0: i32, %arg1: memref<8x256xf32, #tpu.memory_space<vmem>>, %arg2: memref<256x512xbf16, #tpu.memory_space<vmem>>, %arg3: memref<1x512xf32, #tpu.memory_space<vmem>>, %arg4: memref<512x256xbf16, #tpu.memory_space<vmem>>, %arg5: memref<1x256xf32, #tpu.memory_space<vmem>>, %arg6: memref<256x128xbf16, #tpu.memory_space<vmem>>, %arg7: memref<1x128xf32, #tpu.memory_space<vmem>>, %arg8: memref<8x128xf32, #tpu.memory_space<vmem>>) attributes {dimension_semantics = [#tpu.dimension_semantics<parallel>], iteration_bounds = array<i64: 1>, scalar_prefetch = 0 : i64, scratch_operands = 0 : i64, tpu.core_type = #tpu.core_type<tc>, window_params = [{transform_indices = @transform_0, window_bounds = array<i64: 8, 256>}, {pipeline_mode = #tpu.pipeline_mode<synchronous>, transform_indices = @transform_1, window_bounds = array<i64: 256, 512>}, {pipeline_mode = #tpu.pipeline_mode<synchronous>, transform_indices = @transform_2, window_bounds = array<i64: 1, 512>}, {pipeline_mode = #tpu.pipeline_mode<synchronous>, transform_indices = @transform_3, window_bounds = array<i64: 512, 256>}, {pipeline_mode = #tpu.pipeline_mode<synchronous>, transform_indices = @transform_4, window_bounds = array<i64: 1, 256>}, {pipeline_mode = #tpu.pipeline_mode<synchronous>, transform_indices = @transform_5, window_bounds = array<i64: 256, 128>}, {pipeline_mode = #tpu.pipeline_mode<synchronous>, transform_indices = @transform_6, window_bounds = array<i64: 1, 128>}, {transform_indices = @transform_7, window_bounds = array<i64: 8, 128>}]} {
    %c0 = arith.constant 0 : index
    %c0_0 = arith.constant 0 : index
    %0 = vector.load %arg1[%c0, %c0_0] : memref<8x256xf32, #tpu.memory_space<vmem>>, vector<8x256xf32>
    %1 = arith.truncf %0 : vector<8x256xf32> to vector<8x256xbf16>
    %c0_1 = arith.constant 0 : index
    %c0_2 = arith.constant 0 : index
    %2 = vector.load %arg2[%c0_1, %c0_2] : memref<256x512xbf16, #tpu.memory_space<vmem>>, vector<256x512xbf16>
    %cst = arith.constant dense<0.000000e+00> : vector<8x512xf32>
    %3 = tpu.matmul %1, %2, %cst {dimension_numbers = #tpu.dot_dimension_numbers<[1], [0], [0], [1], [0, 0, 1, 1], [], []>} : vector<8x256xbf16>, vector<256x512xbf16>, vector<8x512xf32> -> vector<8x512xf32>
    %c0_3 = arith.constant 0 : index
    %c0_4 = arith.constant 0 : index
    %4 = vector.load %arg3[%c0_3, %c0_4] : memref<1x512xf32, #tpu.memory_space<vmem>>, vector<1x512xf32>
    %5 = vector.broadcast %4 : vector<1x512xf32> to vector<8x512xf32>
    %6 = arith.addf %3, %5 : vector<8x512xf32>
    %cst_5 = arith.constant 0.000000e+00 : f32
    %7 = vector.broadcast %cst_5 : f32 to vector<8x512xf32>
    %8 = arith.maximumf %6, %7 : vector<8x512xf32>
    %9 = arith.truncf %8 : vector<8x512xf32> to vector<8x512xbf16>
    %c0_6 = arith.constant 0 : index
    %c0_7 = arith.constant 0 : index
    %10 = vector.load %arg4[%c0_6, %c0_7] : memref<512x256xbf16, #tpu.memory_space<vmem>>, vector<512x256xbf16>
    %cst_8 = arith.constant dense<0.000000e+00> : vector<8x256xf32>
    %11 = tpu.matmul %9, %10, %cst_8 {dimension_numbers = #tpu.dot_dimension_numbers<[1], [0], [0], [1], [0, 0, 1, 1], [], []>} : vector<8x512xbf16>, vector<512x256xbf16>, vector<8x256xf32> -> vector<8x256xf32>
    %c0_9 = arith.constant 0 : index
    %c0_10 = arith.constant 0 : index
    %12 = vector.load %arg5[%c0_9, %c0_10] : memref<1x256xf32, #tpu.memory_space<vmem>>, vector<1x256xf32>
    %13 = vector.broadcast %12 : vector<1x256xf32> to vector<8x256xf32>
    %14 = arith.addf %11, %13 : vector<8x256xf32>
    %cst_11 = arith.constant 0.000000e+00 : f32
    %15 = vector.broadcast %cst_11 : f32 to vector<8x256xf32>
    %16 = arith.maximumf %14, %15 : vector<8x256xf32>
    %17 = arith.truncf %16 : vector<8x256xf32> to vector<8x256xbf16>
    %c0_12 = arith.constant 0 : index
    %c0_13 = arith.constant 0 : index
    %18 = vector.load %arg6[%c0_12, %c0_13] : memref<256x128xbf16, #tpu.memory_space<vmem>>, vector<256x128xbf16>
    %cst_14 = arith.constant dense<0.000000e+00> : vector<8x128xf32>
    %19 = tpu.matmul %17, %18, %cst_14 {dimension_numbers = #tpu.dot_dimension_numbers<[1], [0], [0], [1], [0, 0, 1, 1], [], []>} : vector<8x256xbf16>, vector<256x128xbf16>, vector<8x128xf32> -> vector<8x128xf32>
    %c0_15 = arith.constant 0 : index
    %c0_16 = arith.constant 0 : index
    %20 = vector.load %arg7[%c0_15, %c0_16] : memref<1x128xf32, #tpu.memory_space<vmem>>, vector<1x128xf32>
    %21 = vector.broadcast %20 : vector<1x128xf32> to vector<8x128xf32>
    %22 = arith.addf %19, %21 : vector<8x128xf32>
    %c0_17 = arith.constant 0 : index
    %c0_18 = arith.constant 0 : index
    %23 = vector.load %arg8[%c0_17, %c0_18] : memref<8x128xf32, #tpu.memory_space<vmem>>, vector<8x128xf32>
    tpu.vector_store %arg8[%c0_17, %c0_18], %22 {strides = array<i32>} : memref<8x128xf32, #tpu.memory_space<vmem>>, vector<8x128xf32>,
    return
  }
  func.func @transform_0(%arg0: i32) -> (i32, i32) {
    %c0_i32 = arith.constant 0 : i32
    %c0_i32_0 = arith.constant 0 : i32
    return %arg0, %c0_i32 : i32, i32
  }
  func.func @transform_1(%arg0: i32) -> (i32, i32) {
    %c0_i32 = arith.constant 0 : i32
    %c0_i32_0 = arith.constant 0 : i32
    %c0_i32_1 = arith.constant 0 : i32
    return %c0_i32, %c0_i32_0 : i32, i32
  }
  func.func @transform_2(%arg0: i32) -> (i32, i32) {
    %c0_i32 = arith.constant 0 : i32
    %c0_i32_0 = arith.constant 0 : i32
    %c0_i32_1 = arith.constant 0 : i32
    return %c0_i32, %c0_i32_0 : i32, i32
  }
  func.func @transform_3(%arg0: i32) -> (i32, i32) {
    %c0_i32 = arith.constant 0 : i32
    %c0_i32_0 = arith.constant 0 : i32
    %c0_i32_1 = arith.constant 0 : i32
    return %c0_i32, %c0_i32_0 : i32, i32
  }
  func.func @transform_4(%arg0: i32) -> (i32, i32) {
    %c0_i32 = arith.constant 0 : i32
    %c0_i32_0 = arith.constant 0 : i32
    %c0_i32_1 = arith.constant 0 : i32
    return %c0_i32, %c0_i32_0 : i32, i32
  }
  func.func @transform_5(%arg0: i32) -> (i32, i32) {
    %c0_i32 = arith.constant 0 : i32
    %c0_i32_0 = arith.constant 0 : i32
    %c0_i32_1 = arith.constant 0 : i32
    return %c0_i32, %c0_i32_0 : i32, i32
  }
  func.func @transform_6(%arg0: i32) -> (i32, i32) {
    %c0_i32 = arith.constant 0 : i32
    %c0_i32_0 = arith.constant 0 : i32
    %c0_i32_1 = arith.constant 0 : i32
    return %c0_i32, %c0_i32_0 : i32, i32
  }
  func.func @transform_7(%arg0: i32) -> (i32, i32) {
    %c0_i32 = arith.constant 0 : i32
    %c0_i32_0 = arith.constant 0 : i32
    return %arg0, %c0_i32 : i32, i32
  }
}

</mosaic_0001>

<bundles_post_ra>
// kernel: uvnet_classifier_forward.1
= control target key start
LH: loop header
LB: loop body
LE: loop exit
PB: predicated region body
PF: predicated region fallthrough
CT: control target
= control target key end

     0   :  { %12 = vsyncpa [#allocation3], 0  ;;  %s1868_s0 = inlined_call_operand.hbm [shape: f32[8,256], index: 0, kind: input, shape index: {}]   ;;  %s1869_s1 = inlined_call_operand.hbm [shape: bf16[256,512], index: 1, kind: input, shape index: {}]   ;;  %s1870_s2 = inlined_call_operand.hbm [shape: f32[1,512], index: 2, kind: input, shape index: {}]   ;;  %s1871_s3 = inlined_call_operand.hbm [shape: bf16[512,256], index: 3, kind: input, shape index: {}]   ;;  %s1872_s4 = inlined_call_operand.vmem [shape: f32[1,256], index: 4, kind: input, shape index: {}]   ;;  %s1873_s5 = inlined_call_operand.hbm [shape: bf16[256,128], index: 5, kind: input, shape index: {}]   ;;  %s1874_s6 = inlined_call_operand.vmem [shape: f32[1,128], index: 6, kind: input, shape index: {}]   ;;  %s1875_s7 = inlined_call_operand.hbm [shape: f32[8,128], index: 7, kind: output, shape index: {}]  }
   0x1   :  { %13 = vsyncpa [#allocation6], 0 }
   0x2   :  { %14 = vsyncpa [#allocation9], 0 }
   0x3   :  { %15 = vsyncpa [#allocation4], 0  ;;  %s1782_s24 = smov [#allocation5]  }
   0x4   :  { %s31_s25 = sshll.u32 %s1782_s24, 4  ;;  %s32_s25 = int_to_ptr.vmem [resolvable:$true] %s31_s25 }
   0x5   :  { %s1662_s26 = scalar_lea.vmem %s32_s25, 8192  ;;  %p1667_p1 = scmp.lt.s32.totalorder %s32_s25, %s32_s25 }
   0x6   :  { %p1663_p0 = scmp.ne.s32.totalorder %s32_s25, %s1662_s26  ;;  %p1668_p2 = scmp.lt.s32.totalorder %s1662_s26, %s1662_s26 }
   0x8   :  { %p1669_p3 = por %p1668_p2, %p1667_p1 }
   0xa   :  { %p1670_p4 = pnand %p1669_p3, %p1663_p0 }
   0xc   :  { %1673 = shalt.err (!%p1670_p4)
}
   0xd   :  { %s1783_s27 = smov 256   ;;  %s1784_s28 = smov 16  }
   0xe   :  { %37 = dma.hbm_to_vmem [thread:$0]  %s1869_s1, 8192, %s32_s25, [#allocation6], %s1783_s27, %s1783_s27, %s1784_s28  }
   0xf   :  { %s1785_s8 = smov [#allocation8]  }
  0x10   :  { %s53_s9 = sshll.u32 %s1785_s8, 4  ;;  %s54_s9 = int_to_ptr.vmem [resolvable:$true] %s53_s9 }
  0x11   :  { %s1682_s10 = scalar_lea.vmem %s54_s9, 8192  ;;  %p1687_p6 = scmp.lt.s32.totalorder %s54_s9, %s54_s9 }
  0x12   :  { %p1683_p5 = scmp.ne.s32.totalorder %s54_s9, %s1682_s10  ;;  %p1688_p7 = scmp.lt.s32.totalorder %s1682_s10, %s1682_s10 }
  0x14   :  { %p1689_p8 = por %p1688_p7, %p1687_p6 }
  0x16   :  { %p1690_p9 = pnand %p1689_p8, %p1683_p5 }
  0x18   :  { %1693 = shalt.err (!%p1690_p9)
}
  0x19   :  { %s1786_s11 = smov 128   ;;  %s1787_s12 = smov 8  }
  0x1a   :  { %59 = dma.hbm_to_vmem [thread:$0]  %s1871_s3, 8192, %s54_s9, [#allocation9], %s1786_s11, %s1786_s11, %s1787_s12  }
  0x1b   :  { %s1788_s15 = smov [#allocation2]   ;;  %s1789_s17 = smov [#allocation7]  }
  0x1c   :  { %s22_s16 = sshll.u32 %s1788_s15, 4  ;;  %s44_s1 = sshll.u32 %s1789_s17, 4  ;;  %s23_s16 = int_to_ptr.vmem [resolvable:$true] %s22_s16  ;;  %s45_s1 = int_to_ptr.vmem [resolvable:$true] %s44_s1 }
  0x1d   :  { %s1702_s18 = scalar_lea.vmem %s23_s16, 256  ;;  %p1707_p11 = scmp.lt.s32.totalorder %s23_s16, %s23_s16 }
  0x1e   :  { %p1703_p10 = scmp.ne.s32.totalorder %s23_s16, %s1702_s18  ;;  %p1708_p12 = scmp.lt.s32.totalorder %s1702_s18, %s1702_s18 }
  0x20   :  { %p1709_p13 = por %p1708_p12, %p1707_p11 }
  0x22   :  { %p1710_p0 = pnand %p1709_p13, %p1703_p10 }
  0x24   :  { %1713 = shalt.err (!%p1710_p0)
}
  0x25   :  { %25 = dma.hbm_to_vmem [thread:$0]  %s1868_s0, 256, %s23_s16, [#allocation3]  }
  0x26   :  { %s1722_s21 = scalar_lea.vmem %s45_s1, 64  ;;  %p1727_p2 = scmp.lt.s32.totalorder %s45_s1, %s45_s1 }
  0x27   :  { %p1723_p1 = scmp.ne.s32.totalorder %s45_s1, %s1722_s21  ;;  %p1728_p3 = scmp.lt.s32.totalorder %s1722_s21, %s1722_s21 }
  0x29   :  { %p1729_p4 = por %p1728_p3, %p1727_p2 }
  0x2b   :  { %p1730_p5 = pnand %p1729_p4, %p1723_p1 }
  0x2d   :  { %1733 = shalt.err (!%p1730_p5)
}
  0x2e   :  { %47 = dma.hbm_to_vmem [thread:$0]  %s1870_s2, 64, %s45_s1, [#allocation6]  }
  0x2f   :  { %s1790_s23 = smov [#allocation10]  }
  0x30   :  { %s67_s24 = sshll.u32 %s1790_s23, 4  ;;  %s68_s24 = int_to_ptr.vmem [resolvable:$true] %s67_s24 }
  0x31   :  { %s1742_s25 = scalar_lea.vmem %s68_s24, 2048  ;;  %p1747_p7 = scmp.lt.s32.totalorder %s68_s24, %s68_s24 }
  0x32   :  { %p1743_p6 = scmp.ne.s32.totalorder %s68_s24, %s1742_s25  ;;  %p1748_p8 = scmp.lt.s32.totalorder %s1742_s25, %s1742_s25 }
  0x34   :  { %p1749_p9 = por %p1748_p8, %p1747_p7 }
  0x36   :  { %p1750_p10 = pnand %p1749_p9, %p1743_p6 }
  0x38   :  { %1753 = shalt.err (!%p1750_p10)
}
  0x39   :  { %s1791_s0 = smov 64   ;;  %s1792_s26 = smov 4  }
  0x3a   :  { %73 = dma.hbm_to_vmem [thread:$0]  %s1873_s5, 2048, %s68_s24, [#allocation9], %s1791_s0, %s1791_s0, %s1792_s26  }
  0x3b   :  { %1774 = dma.done.wait [#allocation3], 256  }
  0x3c   :  { %1775 = vsyncadd [#allocation3], 4294967040 }
  0x3d   :  { %1776 = dma.done.wait [#allocation6], 8256  }
  0x3e   :  { %1777 = vsyncadd [#allocation6], 4294959040 }
  0x3f   :  { %1778 = dma.done.wait [#allocation9], 10240  }
  0x40   :  { %1779 = vsyncadd [#allocation9], 4294957056  ;;  %v1446_v0 = vld [vmem:[#allocation5 + $0xe4] ss:$16 sps:$4 sm:$0xff]   ;;  %v1448_v1 = vld [vmem:[#allocation5 + $0xec] ss:$16 sps:$4 sm:$0xff]  }
  0x41   :  { %502 = vmatprep.subr.bf16.mxu0 %v1446_v0  ;;  %v1450_v2 = vld [vmem:[#allocation5 + $0xe0] ss:$16 sps:$4 sm:$0xff]   ;;  %v1451_v3 = vld [vmem:[#allocation5 + $0xe8] ss:$16 sps:$4 sm:$0xff]   ;;  %543 = vmatprep.subr.bf16.mxu1 %v1448_v1  ;;  %v1452_v4 = vld [vmem:[#allocation5 + $0xc4] ss:$16 sps:$4 sm:$0xff]  }
  0x42   :  { %503 = vmatpush1.bf16.msra.mxu0 %v1450_v2  ;;  %544 = vmatpush1.bf16.msra.mxu1 %v1451_v3  ;;  %v1454_v5 = vld [vmem:[#allocation5 + $0xcc] ss:$16 sps:$4 sm:$0xff]   ;;  %v1456_v6 = vld [vmem:[#allocation5 + $0xc0] ss:$16 sps:$4 sm:$0xff]   ;;  %v1457_v7 = vld [vmem:[#allocation5 + $0xc8] ss:$16 sps:$4 sm:$0xff]  }
  0x43   :  { %504 = vmatprep.subr.bf16.mxu0 %v1452_v4  ;;  %545 = vmatprep.subr.bf16.mxu1 %v1454_v5  ;;  %v1458_v8 = vld [vmem:[#allocation5 + $0xa4] ss:$16 sps:$4 sm:$0xff]   ;;  %v1460_v9 = vld [vmem:[#allocation5 + $0xac] ss:$16 sps:$4 sm:$0xff]   ;;  %v1462_v10 = vld [vmem:[#allocation5 + $0xa0] ss:$16 sps:$4 sm:$0xff]  }
  0x44   :  { %v1463_v11 = vld [vmem:[#allocation5 + $0xa8] ss:$16 sps:$4 sm:$0xff]   ;;  %v1464_v12 = vld [vmem:[#allocation5 + $0x84] ss:$16 sps:$4 sm:$0xff]   ;;  %v1466_v13 = vld [vmem:[#allocation5 + $0x8c] ss:$16 sps:$4 sm:$0xff]  }
  0x45   :  { %v1468_v14 = vld [vmem:[#allocation5 + $0x80] ss:$16 sps:$4 sm:$0xff]   ;;  %v1469_v15 = vld [vmem:[#allocation5 + $0x88] ss:$16 sps:$4 sm:$0xff]   ;;  %v1470_v16 = vld [vmem:[#allocation5 + $0x64] ss:$16 sps:$4 sm:$0xff]  }
  0x46   :  { %505 = vmatpush1.bf16.msra.mxu0 %v1456_v6  ;;  %546 = vmatpush1.bf16.msra.mxu1 %v1457_v7  ;;  %v1472_v17 = vld [vmem:[#allocation5 + $0x6c] ss:$16 sps:$4 sm:$0xff]   ;;  %v1474_v18 = vld [vmem:[#allocation5 + $0x60] ss:$16 sps:$4 sm:$0xff]   ;;  %v1475_v19 = vld [vmem:[#allocation5 + $0x68] ss:$16 sps:$4 sm:$0xff]  }
  0x47   :  { %506 = vmatprep.subr.bf16.mxu0 %v1458_v8  ;;  %547 = vmatprep.subr.bf16.mxu1 %v1460_v9  ;;  %v1476_v20 = vld [vmem:[#allocation5 + $0x44] ss:$16 sps:$4 sm:$0xff]   ;;  %v1478_v21 = vld [vmem:[#allocation5 + $0x4c] ss:$16 sps:$4 sm:$0xff]   ;;  %v1480_v22 = vld [vmem:[#allocation5 + $0x40] ss:$16 sps:$4 sm:$0xff]  }
  0x48   :  { %v1481_v23 = vld [vmem:[#allocation5 + $0x48] ss:$16 sps:$4 sm:$0xff]   ;;  %v1482_v24 = vld [vmem:[#allocation5 + $0x24] ss:$16 sps:$4 sm:$0xff]   ;;  %v1484_v25 = vld [vmem:[#allocation5 + $0x2c] ss:$16 sps:$4 sm:$0xff]  }
  0x49   :  { %v1486_v26 = vld [vmem:[#allocation5 + $0x20] ss:$16 sps:$4 sm:$0xff]   ;;  %v1487_v27 = vld [vmem:[#allocation5 + $0x28] ss:$16 sps:$4 sm:$0xff]   ;;  %v1488_v28 = vld [vmem:[#allocation5 + $0x4] ss:$16 sps:$4 sm:$0xff]  }
  0x4a   :  { %507 = vmatpush1.bf16.msra.mxu0 %v1462_v10  ;;  %548 = vmatpush1.bf16.msra.mxu1 %v1463_v11  ;;  %v1490_v29 = vld [vmem:[#allocation5 + $0xc] ss:$16 sps:$4 sm:$0xff]   ;;  %v1492_v30 = vld [vmem:[#allocation5] ss:$16 sps:$4 sm:$0xff]   ;;  %v1493_v31 = vld [vmem:[#allocation5 + $0x8] ss:$16 sps:$4 sm:$0xff]  }
  0x4b   :  { %508 = vmatprep.subr.bf16.mxu0 %v1464_v12  ;;  %549 = vmatprep.subr.bf16.mxu1 %v1466_v13  ;;  %v1494_v32 = vld [vmem:[#allocation5 + $0x1e4] ss:$16 sps:$4 sm:$0xff]   ;;  %v1496_v33 = vld [vmem:[#allocation5 + $0x1ec] ss:$16 sps:$4 sm:$0xff]   ;;  %v1498_v34 = vld [vmem:[#allocation5 + $0x1e0] ss:$16 sps:$4 sm:$0xff]  }
  0x4c   :  { %v1499_v35 = vld [vmem:[#allocation5 + $0x1e8] ss:$16 sps:$4 sm:$0xff]   ;;  %v1500_v36 = vld [vmem:[#allocation5 + $0x1c4] ss:$16 sps:$4 sm:$0xff]   ;;  %v1502_v37 = vld [vmem:[#allocation5 + $0x1cc] ss:$16 sps:$4 sm:$0xff]  }
  0x4d   :  { %v1504_v38 = vld [vmem:[#allocation5 + $0x1c0] ss:$16 sps:$4 sm:$0xff]   ;;  %v1505_v39 = vld [vmem:[#allocation5 + $0x1c8] ss:$16 sps:$4 sm:$0xff]   ;;  %v1506_v40 = vld [vmem:[#allocation5 + $0x1a4] ss:$16 sps:$4 sm:$0xff]  }
  0x4e   :  { %509 = vmatpush1.bf16.msra.mxu0 %v1468_v14  ;;  %550 = vmatpush1.bf16.msra.mxu1 %v1469_v15  ;;  %v1508_v41 = vld [vmem:[#allocation5 + $0x1ac] ss:$16 sps:$4 sm:$0xff]   ;;  %v1510_v42 = vld [vmem:[#allocation5 + $0x1a0] ss:$16 sps:$4 sm:$0xff]   ;;  %v1511_v43 = vld [vmem:[#allocation5 + $0x1a8] ss:$16 sps:$4 sm:$0xff]  }
  0x4f   :  { %510 = vmatprep.subr.bf16.mxu0 %v1470_v16  ;;  %551 = vmatprep.subr.bf16.mxu1 %v1472_v17  ;;  %v1512_v44 = vld [vmem:[#allocation5 + $0x184] ss:$16 sps:$4 sm:$0xff]   ;;  %v1514_v45 = vld [vmem:[#allocation5 + $0x18c] ss:$16 sps:$4 sm:$0xff]   ;;  %v1516_v48 = vld [vmem:[#allocation5 + $0x180] ss:$16 sps:$4 sm:$0xff]  }
  0x50   :  { %v93_v46 = vld [vmem:[#allocation2 + $0x8] sm:$0xff]  ;;  %v1518_v50 = vld [vmem:[#allocation5 + $0x164] ss:$16 sps:$4 sm:$0xff]   ;;  %v1522_v52 = vld [vmem:[#allocation5 + $0x160] ss:$16 sps:$4 sm:$0xff]   ;;  %s1793_s30 = smov [#allocation11]  }
  0x51   :  { %v95_v47 = vpack.c.bf16 %v93_v46, %v93_v46  ;;  %v1517_v49 = vld [vmem:[#allocation5 + $0x188] ss:$16 sps:$4 sm:$0xff]   ;;  %v1520_v51 = vld [vmem:[#allocation5 + $0x16c] ss:$16 sps:$4 sm:$0xff]   ;;  %v1524_v54 = vld [vmem:[#allocation5 + $0x144] ss:$16 sps:$4 sm:$0xff]  }
  0x52   :  { %511 = vmatpush1.bf16.msra.mxu0 %v1474_v18  ;;  %552 = vmatpush1.bf16.msra.mxu1 %v1475_v19  ;;  %v1523_v53 = vld [vmem:[#allocation5 + $0x168] ss:$16 sps:$4 sm:$0xff]   ;;  %v1526_v55 = vld [vmem:[#allocation5 + $0x14c] ss:$16 sps:$4 sm:$0xff]   ;;  %v1528_v56 = vld [vmem:[#allocation5 + $0x140] ss:$16 sps:$4 sm:$0xff]  }
  0x53   :  { %512 = vmatprep.subr.bf16.mxu0 %v1476_v20  ;;  %553 = vmatprep.subr.bf16.mxu1 %v1478_v21  ;;  %v1529_v57 = vld [vmem:[#allocation5 + $0x148] ss:$16 sps:$4 sm:$0xff]   ;;  %v1530_v58 = vld [vmem:[#allocation5 + $0x124] ss:$16 sps:$4 sm:$0xff]   ;;  %v1532_v59 = vld [vmem:[#allocation5 + $0x12c] ss:$16 sps:$4 sm:$0xff]  }
  0x54   :  { %534 = vmatprep.mubr.bf16.mxu0 %v95_v47  ;;  %575 = vmatprep.mubr.bf16.mxu1 %v95_v47  ;;  %v1534_v60 = vld [vmem:[#allocation5 + $0x120] ss:$16 sps:$4 sm:$0xff]   ;;  %v1535_v61 = vld [vmem:[#allocation5 + $0x128] ss:$16 sps:$4 sm:$0xff]   ;;  %v1536_v62 = vld [vmem:[#allocation5 + $0x104] ss:$16 sps:$4 sm:$0xff]  }
  0x55   :  { %v1538_v63 = vld [vmem:[#allocation5 + $0x10c] ss:$16 sps:$4 sm:$0xff]   ;;  %v1540_v0 = vld [vmem:[#allocation5 + $0x100] ss:$16 sps:$4 sm:$0xff]   ;;  %v1541_v1 = vld [vmem:[#allocation5 + $0x108] ss:$16 sps:$4 sm:$0xff]  }
  0x56   :  { %513 = vmatpush1.bf16.msra.mxu0 %v1480_v22  ;;  %554 = vmatpush1.bf16.msra.mxu1 %v1481_v23  ;;  %v92_v2 = vld [vmem:[#allocation2] sm:$0xff]  ;;  %v1544_v3 = vld [vmem:[#allocation8 + $0x74] ss:$8 sps:$4 sm:$0xff]   ;;  %v1548_v10 = vld [vmem:[#allocation8 + $0x60] ss:$8 sps:$4 sm:$0xff]   ;;  %s1256_s8 = sshll.u32 %s1793_s30, 4  ;;  %s1257_s8 = int_to_ptr.vmem [resolvable:$true] %s1256_s8 }
  0x57   :  { %514 = vmatprep.subr.bf16.mxu0 %v1482_v24  ;;  %555 = vmatprep.subr.bf16.mxu1 %v1484_v25  ;;  %v1547_v4 = vld [vmem:[#allocation8 + $0x174] ss:$8 sps:$4 sm:$0xff]   ;;  %v94_v5 = vpack.c.bf16 %v92_v2, %v92_v2  ;;  %v1542_v6 = vld [vmem:[#allocation8 + $0x70] ss:$8 sps:$4 sm:$0xff]   ;;  %v1550_v8 = vld [vmem:[#allocation8 + $0x64] ss:$8 sps:$4 sm:$0xff]   ;;  %p1759_p12 = scmp.lt.s32.totalorder %s1257_s8, %s1257_s8 }
  0x58   :  { %v1545_v7 = vld [vmem:[#allocation8 + $0x170] ss:$8 sps:$4 sm:$0xff]   ;;  %v1553_v9 = vld [vmem:[#allocation8 + $0x164] ss:$8 sps:$4 sm:$0xff]   ;;  %v1551_v11 = vld [vmem:[#allocation8 + $0x160] ss:$8 sps:$4 sm:$0xff]  }
  0x59   :  { %v1556_v12 = vld [vmem:[#allocation8 + $0x54] ss:$8 sps:$4 sm:$0xff]   ;;  %v1554_v14 = vld [vmem:[#allocation8 + $0x50] ss:$8 sps:$4 sm:$0xff]   ;;  %v1562_v16 = vld [vmem:[#allocation8 + $0x44] ss:$8 sps:$4 sm:$0xff]  }
  0x5a   :  { %515 = vmatpush1.bf16.msra.mxu0 %v1486_v26  ;;  %556 = vmatpush1.bf16.msra.mxu1 %v1487_v27  ;;  %v1559_v13 = vld [vmem:[#allocation8 + $0x154] ss:$8 sps:$4 sm:$0xff]   ;;  %v1557_v15 = vld [vmem:[#allocation8 + $0x150] ss:$8 sps:$4 sm:$0xff]   ;;  %v1565_v17 = vld [vmem:[#allocation8 + $0x144] ss:$8 sps:$4 sm:$0xff]  }
  0x5b   :  { %516 = vmatprep.subr.bf16.mxu0 %v1488_v28  ;;  %557 = vmatprep.subr.bf16.mxu1 %v1490_v29  ;;  %v1560_v18 = vld [vmem:[#allocation8 + $0x40] ss:$8 sps:$4 sm:$0xff]   ;;  %v1568_v20 = vld [vmem:[#allocation8 + $0x34] ss:$8 sps:$4 sm:$0xff]   ;;  %v1566_v22 = vld [vmem:[#allocation8 + $0x30] ss:$8 sps:$4 sm:$0xff]  }
  0x5c   :  { %v1563_v19 = vld [vmem:[#allocation8 + $0x140] ss:$8 sps:$4 sm:$0xff]   ;;  %v1571_v21 = vld [vmem:[#allocation8 + $0x134] ss:$8 sps:$4 sm:$0xff]   ;;  %v1569_v23 = vld [vmem:[#allocation8 + $0x130] ss:$8 sps:$4 sm:$0xff]  }
  0x5d   :  { %v1574_v24 = vld [vmem:[#allocation8 + $0x24] ss:$8 sps:$4 sm:$0xff]   ;;  %v1572_v26 = vld [vmem:[#allocation8 + $0x20] ss:$8 sps:$4 sm:$0xff]   ;;  %v1580_v28 = vld [vmem:[#allocation8 + $0x14] ss:$8 sps:$4 sm:$0xff]  }
  0x5e   :  { %517 = vmatpush1.bf16.msra.mxu0 %v1492_v30  ;;  %558 = vmatpush1.bf16.msra.mxu1 %v1493_v31  ;;  %v1577_v25 = vld [vmem:[#allocation8 + $0x124] ss:$8 sps:$4 sm:$0xff]   ;;  %v1575_v27 = vld [vmem:[#allocation8 + $0x120] ss:$8 sps:$4 sm:$0xff]   ;;  %v1583_v29 = vld [vmem:[#allocation8 + $0x114] ss:$8 sps:$4 sm:$0xff]  }
  0x5f   :  { %518 = vmatprep.subr.bf16.mxu0 %v1494_v32  ;;  %559 = vmatprep.subr.bf16.mxu1 %v1496_v33  ;;  %v1578_v30 = vld [vmem:[#allocation8 + $0x10] ss:$8 sps:$4 sm:$0xff]   ;;  %v1586_v32 = vld [vmem:[#allocation8 + $0x4] ss:$8 sps:$4 sm:$0xff]   ;;  %v1632_v2 = vld [vmem:[#allocation8 + $0x80] ss:$8 sps:$4 sm:$0xff]  }
  0x60   :  { %v1581_v31 = vld [vmem:[#allocation8 + $0x110] ss:$8 sps:$4 sm:$0xff]   ;;  %v1589_v33 = vld [vmem:[#allocation8 + $0x104] ss:$8 sps:$4 sm:$0xff]   ;;  %s1754_s9 = scalar_lea.vmem %s1257_s8, 128 }
  0x61   :  { %v1602_v46 = vld [vmem:[#allocation8 + $0xd0] ss:$8 sps:$4 sm:$0xff]   ;;  %p1755_p11 = scmp.ne.s32.totalorder %s1257_s8, %s1754_s9  ;;  %p1760_p13 = scmp.lt.s32.totalorder %s1754_s9, %s1754_s9 }
  0x62   :  { %519 = vmatpush2.bf16.msra.mxu0 %v1498_v34  ;;  %560 = vmatpush2.bf16.msra.mxu1 %v1499_v35  ;;  %v1584_v34 = vld [vmem:[#allocation8] ss:$8 sps:$4 sm:$0xff]   ;;  %v1605_v47 = vld [vmem:[#allocation8 + $0x1d0] ss:$8 sps:$4 sm:$0xff]  }
  0x63   :  { %520 = vmatprep.subr.bf16.mxu0 %v1500_v36  ;;  %561 = vmatprep.subr.bf16.mxu1 %v1502_v37  ;;  %v1587_v35 = vld [vmem:[#allocation8 + $0x100] ss:$8 sps:$4 sm:$0xff]   ;;  %v1592_v36 = vld [vmem:[#allocation8 + $0xf4] ss:$8 sps:$4 sm:$0xff]   ;;  %p1761_p0 = por %p1760_p13, %p1759_p12 }
  0x64   :  { %v1595_v37 = vld [vmem:[#allocation8 + $0x1f4] ss:$8 sps:$4 sm:$0xff]  }
  0x65   :  { %p1762_p1 = pnand %p1761_p0, %p1755_p11 }
  0x66   :  { %521 = vmatpush2.bf16.msra.mxu0 %v1504_v38  ;;  %562 = vmatpush2.bf16.msra.mxu1 %v1505_v39  ;;  %v1590_v38 = vld [vmem:[#allocation8 + $0xf0] ss:$8 sps:$4 sm:$0xff]  }
  0x67   :  { %522 = vmatprep.subr.bf16.mxu0 %v1506_v40  ;;  %563 = vmatprep.subr.bf16.mxu1 %v1508_v41  ;;  %v1593_v39 = vld [vmem:[#allocation8 + $0x1f0] ss:$8 sps:$4 sm:$0xff]   ;;  %v1598_v40 = vld [vmem:[#allocation8 + $0xe4] ss:$8 sps:$4 sm:$0xff]  }
  0x68   :  { %v1601_v41 = vld [vmem:[#allocation8 + $0x1e4] ss:$8 sps:$4 sm:$0xff]  }
  0x6a   :  { %523 = vmatpush2.bf16.msra.mxu0 %v1510_v42  ;;  %564 = vmatpush2.bf16.msra.mxu1 %v1511_v43  ;;  %v1596_v42 = vld [vmem:[#allocation8 + $0xe0] ss:$8 sps:$4 sm:$0xff]  }
  0x6b   :  { %524 = vmatprep.subr.bf16.mxu0 %v1512_v44  ;;  %565 = vmatprep.subr.bf16.mxu1 %v1514_v45  ;;  %v1599_v43 = vld [vmem:[#allocation8 + $0x1e0] ss:$8 sps:$4 sm:$0xff]   ;;  %v1604_v44 = vld [vmem:[#allocation8 + $0xd4] ss:$8 sps:$4 sm:$0xff]  }
  0x6c   :  { %v1607_v45 = vld [vmem:[#allocation8 + $0x1d4] ss:$8 sps:$4 sm:$0xff]  }
  0x6e   :  { %525 = vmatpush2.bf16.msra.mxu0 %v1516_v48  ;;  %566 = vmatpush2.bf16.msra.mxu1 %v1517_v49  ;;  %v1610_v48 = vld [vmem:[#allocation8 + $0xc4] ss:$8 sps:$4 sm:$0xff]  }
  0x6f   :  { %526 = vmatprep.subr.bf16.mxu0 %v1518_v50  ;;  %567 = vmatprep.subr.bf16.mxu1 %v1520_v51  ;;  %v1613_v49 = vld [vmem:[#allocation8 + $0x1c4] ss:$8 sps:$4 sm:$0xff]   ;;  %v1608_v50 = vld [vmem:[#allocation8 + $0xc0] ss:$8 sps:$4 sm:$0xff]  }
  0x70   :  { %v1611_v51 = vld [vmem:[#allocation8 + $0x1c0] ss:$8 sps:$4 sm:$0xff]  }
  0x72   :  { %527 = vmatpush2.bf16.msra.mxu0 %v1522_v52  ;;  %568 = vmatpush2.bf16.msra.mxu1 %v1523_v53  ;;  %v1616_v52 = vld [vmem:[#allocation8 + $0xb4] ss:$8 sps:$4 sm:$0xff]  }
  0x73   :  { %528 = vmatprep.subr.bf16.mxu0 %v1524_v54  ;;  %569 = vmatprep.subr.bf16.mxu1 %v1526_v55  ;;  %v1619_v53 = vld [vmem:[#allocation8 + $0x1b4] ss:$8 sps:$4 sm:$0xff]   ;;  %v1614_v54 = vld [vmem:[#allocation8 + $0xb0] ss:$8 sps:$4 sm:$0xff]  }
  0x74   :  { %v1617_v55 = vld [vmem:[#allocation8 + $0x1b0] ss:$8 sps:$4 sm:$0xff]  }
  0x76   :  { %529 = vmatpush2.bf16.msra.mxu0 %v1528_v56  ;;  %570 = vmatpush2.bf16.msra.mxu1 %v1529_v57  ;;  %v1622_v56 = vld [vmem:[#allocation8 + $0xa4] ss:$8 sps:$4 sm:$0xff]  }
  0x77   :  { %530 = vmatprep.subr.bf16.mxu0 %v1530_v58  ;;  %571 = vmatprep.subr.bf16.mxu1 %v1532_v59  ;;  %v1625_v57 = vld [vmem:[#allocation8 + $0x1a4] ss:$8 sps:$4 sm:$0xff]   ;;  %v1620_v58 = vld [vmem:[#allocation8 + $0xa0] ss:$8 sps:$4 sm:$0xff]  }
  0x78   :  { %v1623_v59 = vld [vmem:[#allocation8 + $0x1a0] ss:$8 sps:$4 sm:$0xff]  }
  0x7a   :  { %531 = vmatpush2.bf16.msra.mxu0 %v1534_v60  ;;  %572 = vmatpush2.bf16.msra.mxu1 %v1535_v61  ;;  %v1628_v60 = vld [vmem:[#allocation8 + $0x94] ss:$8 sps:$4 sm:$0xff]  }
  0x7b   :  { %532 = vmatprep.subr.bf16.mxu0 %v1536_v62  ;;  %573 = vmatprep.subr.bf16.mxu1 %v1538_v63  ;;  %v1631_v61 = vld [vmem:[#allocation8 + $0x194] ss:$8 sps:$4 sm:$0xff]   ;;  %v1626_v62 = vld [vmem:[#allocation8 + $0x90] ss:$8 sps:$4 sm:$0xff]  }
  0x7c   :  { %v1629_v63 = vld [vmem:[#allocation8 + $0x190] ss:$8 sps:$4 sm:$0xff]  }
  0x7e   :  { %533 = vmatpush2.bf16.msra.mxu0 %v1540_v0  ;;  %574 = vmatpush2.bf16.msra.mxu1 %v1541_v1  ;;  %v1634_v0 = vld [vmem:[#allocation8 + $0x84] ss:$8 sps:$4 sm:$0xff]  }
  0x7f   :  { %988 = vmatprep.subr.bf16.mxu0 %v1544_v3  ;;  %1029 = vmatprep.subr.bf16.mxu1 %v1547_v4  ;;  %v1637_v1 = vld [vmem:[#allocation8 + $0x184] ss:$8 sps:$4 sm:$0xff]   ;;  %v1635_v3 = vld [vmem:[#allocation8 + $0x180] ss:$8 sps:$4 sm:$0xff]   ;;  %v1638_v4 = vld [vmem:[#allocation10 + $0x78] sm:$0xff]  }
  0x81   :  { %535 = vmatmul.mubr.bf16.vlgmr.msra.gmra.mxu0 %v94_v5  ;;  %576 = vmatmul.mubr.bf16.vlgmr.msra.gmra.mxu1 %v94_v5  ;;  %v162_v5 = vlaneseq }
  0x82   :  { %989 = vmatpush1.bf16.msra.mxu0 %v1542_v6  ;;  %1030 = vmatpush1.bf16.msra.mxu1 %v1545_v7 }
  0x83   :  { %990 = vmatprep.subr.bf16.mxu0 %v1550_v8  ;;  %1031 = vmatprep.subr.bf16.mxu1 %v1553_v9  ;;  %v1849_v6 = vshrl.u32 %v162_v5, 7  ;;  %v160_v9 = vld [vmem:[#allocation7] sm:$0xf] }
  0x85   :  { %v164_v7 = vsub.s32 0, %v1849_v6  ;;  %v172_v8 = vsub.s32 2, %v1849_v6 }
  0x86   :  { %991 = vmatpush1.bf16.msra.mxu0 %v1548_v10  ;;  %1032 = vmatpush1.bf16.msra.mxu1 %v1551_v11  ;;  %v168_v10 = vsub.s32 1, %v1849_v6  ;;  %v176_v11 = vsub.s32 3, %v1849_v6 }
  0x87   :  { %992 = vmatprep.subr.bf16.mxu0 %v1556_v12  ;;  %1033 = vmatprep.subr.bf16.mxu1 %v1559_v13  ;;  %v165_v12 = vrot.slane %v160_v9, %v164_v7  ;;  %v173_v13 = vrot.slane %v160_v9, %v172_v8 }
  0x8a   :  { %993 = vmatpush1.bf16.msra.mxu0 %v1554_v14  ;;  %1034 = vmatpush1.bf16.msra.mxu1 %v1557_v15  ;;  %v169_v14 = vrot.slane %v160_v9, %v168_v10  ;;  %v177_v15 = vrot.slane %v160_v9, %v176_v11 }
  0x8b   :  { %994 = vmatprep.subr.bf16.mxu0 %v1562_v16  ;;  %1035 = vmatprep.subr.bf16.mxu1 %v1565_v17 }
  0x8e   :  { %995 = vmatpush1.bf16.msra.mxu0 %v1560_v18  ;;  %1036 = vmatpush1.bf16.msra.mxu1 %v1563_v19 }
  0x8f   :  { %996 = vmatprep.subr.bf16.mxu0 %v1568_v20  ;;  %1037 = vmatprep.subr.bf16.mxu1 %v1571_v21 }
  0x92   :  { %997 = vmatpush1.bf16.msra.mxu0 %v1566_v22  ;;  %1038 = vmatpush1.bf16.msra.mxu1 %v1569_v23 }
  0x93   :  { %998 = vmatprep.subr.bf16.mxu0 %v1574_v24  ;;  %1039 = vmatprep.subr.bf16.mxu1 %v1577_v25 }
  0x96   :  { %999 = vmatpush1.bf16.msra.mxu0 %v1572_v26  ;;  %1040 = vmatpush1.bf16.msra.mxu1 %v1575_v27 }
  0x97   :  { %1000 = vmatprep.subr.bf16.mxu0 %v1580_v28  ;;  %1041 = vmatprep.subr.bf16.mxu1 %v1583_v29 }
  0x9a   :  { %1001 = vmatpush1.bf16.msra.mxu0 %v1578_v30  ;;  %1042 = vmatpush1.bf16.msra.mxu1 %v1581_v31 }
  0x9b   :  { %1002 = vmatprep.subr.bf16.mxu0 %v1586_v32  ;;  %1043 = vmatprep.subr.bf16.mxu1 %v1589_v33 }
  0x9e   :  { %1003 = vmatpush1.bf16.msra.mxu0 %v1584_v34  ;;  %1044 = vmatpush1.bf16.msra.mxu1 %v1587_v35  ;;  %v1639_v35 = vld [vmem:[#allocation10 + $0x38] sm:$0xff]  }
  0x9f   :  { %1004 = vmatprep.subr.bf16.mxu0 %v1592_v36  ;;  %1045 = vmatprep.subr.bf16.mxu1 %v1595_v37  ;;  %v1640_v37 = vld [vmem:[#allocation10 + $0x70] sm:$0xff]  }
  0xa2   :  { %1005 = vmatpush2.bf16.msra.mxu0 %v1590_v38  ;;  %1046 = vmatpush2.bf16.msra.mxu1 %v1593_v39  ;;  %v1641_v38 = vld [vmem:[#allocation10 + $0x30] sm:$0xff]   ;;  %v1642_v39 = vld [vmem:[#allocation10 + $0x68] sm:$0xff]  }
  0xa3   :  { %1006 = vmatprep.subr.bf16.mxu0 %v1598_v40  ;;  %1047 = vmatprep.subr.bf16.mxu1 %v1601_v41  ;;  %v1643_v40 = vld [vmem:[#allocation10 + $0x28] sm:$0xff]   ;;  %v1644_v41 = vld [vmem:[#allocation10 + $0x60] sm:$0xff]  }
  0xa6   :  { %1007 = vmatpush2.bf16.msra.mxu0 %v1596_v42  ;;  %1048 = vmatpush2.bf16.msra.mxu1 %v1599_v43  ;;  %v1645_v42 = vld [vmem:[#allocation10 + $0x20] sm:$0xff]   ;;  %v1646_v43 = vld [vmem:[#allocation10 + $0x58] sm:$0xff]  }
  0xa7   :  { %1008 = vmatprep.subr.bf16.mxu0 %v1604_v44  ;;  %1049 = vmatprep.subr.bf16.mxu1 %v1607_v45  ;;  %v1647_v44 = vld [vmem:[#allocation10 + $0x18] sm:$0xff]   ;;  %v1648_v45 = vld [vmem:[#allocation10 + $0x50] sm:$0xff]  }
  0xaa   :  { %1009 = vmatpush2.bf16.msra.mxu0 %v1602_v46  ;;  %1050 = vmatpush2.bf16.msra.mxu1 %v1605_v47  ;;  %v1649_v46 = vld [vmem:[#allocation10 + $0x10] sm:$0xff]   ;;  %v1650_v47 = vld [vmem:[#allocation10 + $0x48] sm:$0xff]  }
  0xab   :  { %1010 = vmatprep.subr.bf16.mxu0 %v1610_v48  ;;  %1051 = vmatprep.subr.bf16.mxu1 %v1613_v49  ;;  %v1651_v48 = vld [vmem:[#allocation10 + $0x8] sm:$0xff]   ;;  %v1652_v49 = vld [vmem:[#allocation10 + $0x40] sm:$0xff]  }
  0xae   :  { %1011 = vmatpush2.bf16.msra.mxu0 %v1608_v50  ;;  %1052 = vmatpush2.bf16.msra.mxu1 %v1611_v51  ;;  %v1653_v50 = vld [vmem:[#allocation10] sm:$0xff]   ;;  %v656_v51 = vld [vmem:[%s1872_s4] sm:$0x3] }
  0xaf   :  { %1012 = vmatprep.subr.bf16.mxu0 %v1616_v52  ;;  %1053 = vmatprep.subr.bf16.mxu1 %v1619_v53  ;;  %v661_v52 = vrot.slane %v656_v51, %v164_v7  ;;  %v665_v53 = vrot.slane %v656_v51, %v168_v10  ;;  %v1395_v7 = vld [vmem:[%s1874_s6] ss:$0 sm:$0xff] }
  0xb2   :  { %1013 = vmatpush2.bf16.msra.mxu0 %v1614_v54  ;;  %1054 = vmatpush2.bf16.msra.mxu1 %v1617_v55 }
  0xb3   :  { %1014 = vmatprep.subr.bf16.mxu0 %v1622_v56  ;;  %1055 = vmatprep.subr.bf16.mxu1 %v1625_v57 }
  0xb6   :  { %1015 = vmatpush2.bf16.msra.mxu0 %v1620_v58  ;;  %1056 = vmatpush2.bf16.msra.mxu1 %v1623_v59 }
  0xb7   :  { %1016 = vmatprep.subr.bf16.mxu0 %v1628_v60  ;;  %1057 = vmatprep.subr.bf16.mxu1 %v1631_v61 }
  0xba   :  { %1017 = vmatpush2.bf16.msra.mxu0 %v1626_v62  ;;  %1058 = vmatpush2.bf16.msra.mxu1 %v1629_v63 }
  0xbb   :  { %1018 = vmatprep.subr.bf16.mxu0 %v1634_v0  ;;  %1059 = vmatprep.subr.bf16.mxu1 %v1637_v1 }
  0xbe   :  { %1019 = vmatpush2.bf16.msra.mxu0 %v1632_v2  ;;  %1060 = vmatpush2.bf16.msra.mxu1 %v1635_v3 }
  0xbf   :  { %1412 = vmatprep.subr.bf16.mxu0 %v1638_v4 }
 0x141   :  { %v536_v16 = vpop.f32.mrf.mxu0  ;;  %v577_v17 = vpop.f32.mrf.mxu1 }
 0x142   :  { %v537_v18 = vadd.f32 %v536_v16, %v165_v12  ;;  %v578_v19 = vadd.f32 %v577_v17, %v173_v13 }
 0x143   :  { %v538_v20 = vpop.f32.mrf.mxu0  ;;  %v579_v21 = vpop.f32.mrf.mxu1 }
 0x144   :  { %v586_v22 = vmax.f32 %v578_v19, 0.0  ;;  %v539_v23 = vadd.f32 %v538_v20, %v169_v14  ;;  %v580_v24 = vadd.f32 %v579_v21, %v177_v15  ;;  %v584_v25 = vmax.f32 %v537_v18, 0.0 }
 0x145   :  { %v540_v26 = vpop.f32.mrf.mxu0  ;;  %v581_v27 = vpop.f32.mrf.mxu1 }
 0x146   :  { %v585_v28 = vmax.f32 %v539_v23, 0.0  ;;  %v587_v29 = vmax.f32 %v580_v24, 0.0  ;;  %v590_v30 = vpack.c.bf16 %v586_v22, %v586_v22  ;;  %v588_v36 = vpack.c.bf16 %v584_v25, %v584_v25 }
 0x147   :  { %v541_v31 = vpop.f32.mrf.mxu0  ;;  %v582_v32 = vpop.f32.mrf.mxu1 }
 0x148   :  { %v589_v33 = vpack.c.bf16 %v585_v28, %v585_v28  ;;  %v591_v34 = vpack.c.bf16 %v587_v29, %v587_v29 }
 0x14a   :  { %1020 = vmatprep.mubr.bf16.mxu0 %v589_v33  ;;  %1061 = vmatprep.mubr.bf16.mxu1 %v591_v34 }
 0x14b   :  { %1021 = vmatmul.mubr.bf16.vlgmr.msra.gmra.mxu0 %v588_v36  ;;  %1062 = vmatmul.mubr.bf16.vlgmr.msra.gmra.mxu1 %v590_v30 }
 0x14c   :  { %1413 = vmatpush3.bf16.msra.mxu0 %v1639_v35 }
 0x14d   :  { %1414 = vmatprep.subr.bf16.mxu0 %v1640_v37 }
 0x150   :  { %1415 = vmatpush3.bf16.msra.mxu0 %v1641_v38 }
 0x151   :  { %1416 = vmatprep.subr.bf16.mxu0 %v1642_v39 }
 0x154   :  { %1417 = vmatpush3.bf16.msra.mxu0 %v1643_v40 }
 0x155   :  { %1418 = vmatprep.subr.bf16.mxu0 %v1644_v41 }
 0x158   :  { %1419 = vmatpush3.bf16.msra.mxu0 %v1645_v42 }
 0x159   :  { %1420 = vmatprep.subr.bf16.mxu0 %v1646_v43 }
 0x15c   :  { %1421 = vmatpush3.bf16.msra.mxu0 %v1647_v44 }
 0x15d   :  { %1422 = vmatprep.subr.bf16.mxu0 %v1648_v45 }
 0x160   :  { %1423 = vmatpush3.bf16.msra.mxu0 %v1649_v46 }
 0x161   :  { %1424 = vmatprep.subr.bf16.mxu0 %v1650_v47 }
 0x164   :  { %1425 = vmatpush3.bf16.msra.mxu0 %v1651_v48 }
 0x165   :  { %1426 = vmatprep.subr.bf16.mxu0 %v1652_v49 }
 0x168   :  { %1427 = vmatpush3.bf16.msra.mxu0 %v1653_v50 }
 0x20b   :  { %v1022_v54 = vpop.f32.mrf.mxu0  ;;  %v1063_v55 = vpop.f32.mrf.mxu1 }
 0x20c   :  { %v1023_v56 = vadd.f32 %v1022_v54, %v661_v52 }
 0x20d   :  { %v1024_v57 = vpop.f32.mrf.mxu0  ;;  %v1065_v58 = vpop.f32.mrf.mxu1 }
 0x20e   :  { %v1064_v59 = vadd.f32 %v1063_v55, %v1023_v56  ;;  %v1025_v60 = vadd.f32 %v1024_v57, %v665_v53 }
 0x20f   :  { %v1026_v61 = vpop.f32.mrf.mxu0  ;;  %v1067_v62 = vpop.f32.mrf.mxu1 }
 0x210   :  { %v1066_v63 = vadd.f32 %v1065_v58, %v1025_v60  ;;  %v1070_v0 = vmax.f32 %v1064_v59, 0.0 }
 0x211   :  { %v1027_v1 = vpop.f32.mrf.mxu0  ;;  %v1068_v2 = vpop.f32.mrf.mxu1 }
 0x212   :  { %v1071_v3 = vmax.f32 %v1066_v63, 0.0  ;;  %v1072_v5 = vpack.c.bf16 %v1070_v0, %v1070_v0 }
 0x214   :  { %v1073_v4 = vpack.c.bf16 %v1071_v3, %v1071_v3 }
 0x216   :  { %1241 = vmatprep.mubr.bf16.mxu0 %v1073_v4 }
 0x217   :  { %1242 = vmatmul.mubr.bf16.vlgmr.msra.gmra.mxu0 %v1072_v5 }
 0x2d7   :  { %v1428_v6 = vpop.f32.mrf.mxu0 }
 0x2d9   :  { %v1429_v8 = vpop.f32.mrf.mxu0 }
 0x2da   :  { %v1430_v9 = vadd.f32 %v1429_v8, %v1428_v6 }
 0x2db   :  { %v1431_v10 = vpop.f32.mrf.mxu0 }
 0x2dc   :  { %v1244_v11 = vadd.f32 %v1430_v9, %v1395_v7 }
 0x2dd   :  { %v1432_v12 = vpop.f32.mrf.mxu0 }
 0x2de   :  { %1249 = vst [vmem:[#allocation11] sm:$0xff] %v1244_v11 }
 0x2df   :  { %1765 = shalt.err (!%p1762_p1)
}
 0x2e0   :  { %1259 = dma.vmem_to_hbm [thread:$0]  %s1257_s8, 128, %s1875_s7, [#allocation4]  }
 0x2e1   :  { %1780 = dma.done.wait [#allocation4], 128  }
 0x2e2   :  { %1781 = vsyncadd [#allocation4], 4294967168 }
 0x2e3   :  { %1263 = vsyncpa [#allocation3], 1 }
 0x2e4   :  { %1264 = vsyncpa [#allocation6], 1 }
 0x2e5   :  { %1265 = vsyncpa [#allocation9], 1 }
 0x2e6   :  { %1266 = vsyncpa [#allocation4], 1 }

</bundles_post_ra>
